<compile_context>
chip_gen: v7x
topology: tpu7x:2x2x1
jax: 0.10.0
libtpu: 0.0.40
codegen_flags: <defaults>
</compile_context>

<pallas_src>
import functools

import jax
import jax.numpy as jnp
from jax.experimental import pallas as pl
from jax.experimental.pallas import tpu as pltpu


def _round_up(a: int, b: int) -> int:
    return (a + b - 1) // b * b


def _cdiv(a: int, b: int) -> int:
    return (a + b - 1) // b


def _detect_tpu():
    """Best-effort (vmem_capacity_bytes, device_kind.lower()) with safe fallbacks."""
    kind = ""
    vmem_cap = 128 * 1024 * 1024
    try:
        kind = jax.devices()[0].device_kind.lower()
    except Exception:
        pass
    try:
        vmem_cap = int(getattr(pltpu.get_tpu_info(), "vmem_capacity_bytes", vmem_cap))
    except Exception:
        if "v7" in kind:
            vmem_cap = 64 * 1024 * 1024
    return vmem_cap, kind


def ffn_kernel(x_ref, w1_ref, b1_ref, w2_ref, b2_ref, o_ref, acc_ref, *, n_j):
    # x_ref : (tm, d_model_p)   bf16
    # w1_ref: (d_model_p, tf)   bf16 (squeezed from blocked W1)   b1_ref: (1, tf) f32
    # w2_ref: (tf, d_model_p)   bf16                              b2_ref: (1, d_model_p) f32
    # o_ref : (tm, d_model_p)   out dtype
    # acc_ref: (tm, d_model_p)  f32 scratch, resident across the d_ff axis
    j = pl.program_id(1)

    # First matmul (MXU, bf16 in / f32 acc), bias + ReLU on this d_ff slice.
    h = jnp.dot(x_ref[...], w1_ref[...], preferred_element_type=jnp.float32)
    h = jnp.maximum(h + b1_ref[...], 0.0)

    # Second matmul: this d_ff slice's contribution to the output tile.
    contrib = jnp.dot(h.astype(w2_ref.dtype), w2_ref[...],
                      preferred_element_type=jnp.float32)

    if n_j == 1:
        # Single reduction step: no accumulator round trip at all.
        o_ref[...] = (contrib + b2_ref[...]).astype(o_ref.dtype)
    else:
        @pl.when(j == 0)
        def _():
            acc_ref[...] = contrib                       # no zero-fill pass

        @pl.when(jnp.logical_and(j > 0, j < n_j - 1))
        def _():
            acc_ref[...] = acc_ref[...] + contrib

        @pl.when(j == n_j - 1)
        def _():
            # Fuse final contribution + bias directly into the output write.
            o_ref[...] = (acc_ref[...] + contrib + b2_ref[...]).astype(o_ref.dtype)


def feed_forward(x, w1, b1, w2, b2, *, tm=None, tf=None):
    """x: (..., d_model). w1: (d_model, d_ff), b1: (d_ff,),
    w2: (d_ff, d_model), b2: (d_model,). Returns (..., d_model)."""
    out_dtype = x.dtype
    d_model = x.shape[-1]
    d_ff = w1.shape[1]
    lead = x.shape[:-1]
    M = 1
    for s in lead:
        M *= s

    d_model_p = _round_up(d_model, 128)
    d_ff_128 = _round_up(d_ff, 128)
    itemsize_out = jnp.dtype(out_dtype).itemsize

    # ---- generation-aware tile preferences & VMEM cap ---------------------
    vmem_cap, kind = _detect_tpu()
    is_v7x = ("v7" in kind) or (vmem_cap <= 80 * 1024 * 1024)
    is_v6e = ("v6" in kind) or ("trillium" in kind)
    is_v5e = ("v5e" in kind) or ("v5 lite" in kind) or ("v5litepod" in kind)

    if is_v7x:
        tm_pref, tf_pref = 512, 512       # 64 MiB VMEM: small weight slabs
    elif is_v6e:
        tm_pref, tf_pref = 1024, 1024     # bigger row tile -> MXU-bound on weights
    elif is_v5e:
        tm_pref, tf_pref = 512, 512       # MXU-bound anyway; save VMEM/spill
    else:
        tm_pref, tf_pref = 512, 1024

    # ---- row tile ----------------------------------------------------------
    if tm is None:
        if M >= 128:
            tm = min(tm_pref, _round_up(M, 128))
        else:
            # bf16 packs two rows per sublane -> multiple of 16 for tiny M.
            tm = _round_up(max(M, 16), 16)
        if is_v7x:
            # 2 TensorCores shard the "parallel" row axis: keep >=2 row tiles.
            while _cdiv(M, tm) < 2 and tm > 128:
                tm = max(128, tm // 2)

    # ---- d_ff block --------------------------------------------------------
    if tf is None:
        tf = min(tf_pref, d_ff_128)

    # ---- VMEM budget (double-buffered tiles + accumulator + h intermediate) -
    def vmem_budget(tm_, tf_):
        return (
            2 * tm_ * d_model_p * 2                 # x tile (bf16)
            + 2 * d_model_p * tf_ * 2               # W1 slab (bf16)
            + 2 * tf_ * d_model_p * 2               # W2 slab (bf16)
            + 2 * tf_ * 4                           # b1 slice
            + 2 * d_model_p * 4                     # b2
            + 2 * tm_ * d_model_p * itemsize_out    # out tile
            + tm_ * d_model_p * 4                   # f32 accumulator scratch
            + tm_ * tf_ * (4 + 2)                   # (tm,tf) f32 h + bf16 copy
        )

    def vmem_limit_for(tm_, tf_):
        return int(vmem_budget(tm_, tf_) * 1.4) + (4 << 20)

    vmem_cap_limit = max(32 * 1024 * 1024,
                         min(vmem_cap - (12 << 20), 100 * 1024 * 1024))

    # Shrink tiles until the footprint fits the per-generation cap (required
    # for v7x's 64 MiB physical VMEM at large d_model/d_ff).
    while vmem_limit_for(tm, tf) > vmem_cap_limit and tf > 128:
        tf = max(128, tf // 2)
    while vmem_limit_for(tm, tf) > vmem_cap_limit and tm > 128:
        tm = max(128, tm // 2)

    vmem_limit = min(vmem_limit_for(tm, tf), vmem_cap_limit)

    # ---- padded problem sizes ----------------------------------------------
    d_ff_p = _round_up(d_ff_128, tf)
    M_p = _round_up(M, tm)
    n_ffb = d_ff_p // tf
    n_row_tiles = M_p // tm
    grid = (n_row_tiles, n_ffb)

    # ---- pad & cast operands (zero padding contributes nothing) ------------
    x2 = x.reshape(M, d_model)
    x2 = jnp.pad(x2, ((0, M_p - M), (0, d_model_p - d_model))).astype(jnp.bfloat16)

    # W1 in blocked layout (n_ffb, d_model_p, tf): each slab DMA is contiguous.
    w1_p = jnp.pad(w1, ((0, d_model_p - d_model), (0, d_ff_p - d_ff))).astype(jnp.bfloat16)
    w1_blk = w1_p.reshape(d_model_p, n_ffb, tf).transpose(1, 0, 2)

    # W2 row slabs (tf, d_model_p) are already contiguous in row-major order.
    w2_p = jnp.pad(w2, ((0, d_ff_p - d_ff), (0, d_model_p - d_model))).astype(jnp.bfloat16)
    b1_p = jnp.pad(b1, (0, d_ff_p - d_ff)).astype(jnp.float32).reshape(1, d_ff_p)
    b2_p = jnp.pad(b2, (0, d_model_p - d_model)).astype(jnp.float32).reshape(1, d_model_p)

    # ---- cost estimate (weights re-streamed once per row tile) -------------
    cost = pl.CostEstimate(
        flops=4 * M * d_model * d_ff,      # two matmuls, 2*M*K*N each
        transcendentals=0,
        bytes_accessed=(
            x2.size * 2
            + (w1_blk.size + w2_p.size) * 2 * n_row_tiles
            + (b1_p.size + b2_p.size) * 4 * n_row_tiles
            + M_p * d_model_p * itemsize_out),
    )

    kernel = functools.partial(ffn_kernel, n_j=n_ffb)

    out = pl.pallas_call(
        kernel,
        out_shape=jax.ShapeDtypeStruct((M_p, d_model_p), out_dtype),
        grid_spec=pltpu.PrefetchScalarGridSpec(
            num_scalar_prefetch=0,
            grid=grid,
            in_specs=[
                pl.BlockSpec((tm, d_model_p), lambda i, j: (i, 0)),            # x rows
                pl.BlockSpec((None, d_model_p, tf), lambda i, j: (j, 0, 0)),   # W1 slab (blocked)
                pl.BlockSpec((1, tf), lambda i, j: (0, j)),                    # b1 slice
                pl.BlockSpec((tf, d_model_p), lambda i, j: (j, 0)),            # W2 slab
                pl.BlockSpec((1, d_model_p), lambda i, j: (0, 0)),             # b2
            ],
            out_specs=pl.BlockSpec((tm, d_model_p), lambda i, j: (i, 0)),
            scratch_shapes=[pltpu.VMEM((tm, d_model_p), jnp.float32)],
        ),
        compiler_params=pltpu.CompilerParams(
            dimension_semantics=("parallel", "arbitrary"),
            vmem_limit_bytes=vmem_limit,
        ),
        cost_estimate=cost,
    )(x2, w1_blk, b1_p, w2_p, b2_p)

    return out[:M, :d_model].reshape(*lead, d_model)


if __name__ == "__main__":
    # Small shapes consistent with the module: batch=2, seq=8, d_model=32, d_ff=64
    batch, seq, d_model, d_ff = 2, 8, 32, 64

    key = jax.random.PRNGKey(0)
    kx, kw1, kb1, kw2, kb2 = jax.random.split(key, 5)

    x = jax.random.normal(kx, (batch, seq, d_model), dtype=jnp.float32)

    # PyTorch Linear weight is (out, in); we store the transpose (in, out).
    lim1 = 1.0 / (d_model ** 0.5)
    w1 = jax.random.uniform(kw1, (d_model, d_ff), jnp.float32, -lim1, lim1)
    b1 = jax.random.uniform(kb1, (d_ff,), jnp.float32, -lim1, lim1)
    lim2 = 1.0 / (d_ff ** 0.5)
    w2 = jax.random.uniform(kw2, (d_ff, d_model), jnp.float32, -lim2, lim2)
    b2 = jax.random.uniform(kb2, (d_model,), jnp.float32, -lim2, lim2)

    y = feed_forward(x, w1, b1, w2, b2)
    jax.block_until_ready(y)

    # Pure-JAX f32 reference; tolerance loosened for bf16 MXU operands.
    ref = jnp.maximum(x @ w1 + b1, 0.0) @ w2 + b2
    assert y.shape == (batch, seq, d_model)
    assert jnp.allclose(y, ref, atol=3e-2, rtol=3e-2), float(jnp.max(jnp.abs(y - ref)))

    print("KERNEL_OK")
</pallas_src>

<mosaic_0001>
module attributes {stable_mosaic.version = 11 : i64} {
  func.func @ffn_kernel(%arg0: i32, %arg1: i32, %arg2: memref<16x128xbf16, #tpu.memory_space<vmem>>, %arg3: memref<1x128x128xbf16, #tpu.memory_space<vmem>>, %arg4: memref<1x128xf32, #tpu.memory_space<vmem>>, %arg5: memref<128x128xbf16, #tpu.memory_space<vmem>>, %arg6: memref<1x128xf32, #tpu.memory_space<vmem>>, %arg7: memref<16x128xf32, #tpu.memory_space<vmem>>, %arg8: memref<16x128xf32, #tpu.memory_space<vmem>>) attributes {dimension_semantics = [#tpu.dimension_semantics<parallel>, #tpu.dimension_semantics<arbitrary>], iteration_bounds = array<i64: 1, 1>, scalar_prefetch = 0 : i64, scratch_operands = 1 : i64, tpu.core_type = #tpu.core_type<tc>, window_params = [{transform_indices = @transform_0, window_bounds = array<i64: 16, 128>}, {transform_indices = @transform_1, window_bounds = array<i64: 1, 128, 128>}, {transform_indices = @transform_2, window_bounds = array<i64: 1, 128>}, {transform_indices = @transform_3, window_bounds = array<i64: 128, 128>}, {pipeline_mode = #tpu.pipeline_mode<synchronous>, transform_indices = @transform_4, window_bounds = array<i64: 1, 128>}, {transform_indices = @transform_5, window_bounds = array<i64: 16, 128>}]} {
    %c0 = arith.constant 0 : index
    %c0_0 = arith.constant 0 : index
    %0 = vector.load %arg2[%c0, %c0_0] : memref<16x128xbf16, #tpu.memory_space<vmem>>, vector<16x128xbf16>
    %c0_1 = arith.constant 0 : index
    %c0_2 = arith.constant 0 : index
    %c0_3 = arith.constant 0 : index
    %1 = vector.load %arg3[%c0_1, %c0_2, %c0_3] : memref<1x128x128xbf16, #tpu.memory_space<vmem>>, vector<1x128x128xbf16>
    %2 = vector.shape_cast %1 : vector<1x128x128xbf16> to vector<128x128xbf16>
    %cst = arith.constant dense<0.000000e+00> : vector<16x128xf32>
    %3 = tpu.matmul %0, %2, %cst {dimension_numbers = #tpu.dot_dimension_numbers<[1], [0], [0], [1], [0, 0, 1, 1], [], []>} : vector<16x128xbf16>, vector<128x128xbf16>, vector<16x128xf32> -> vector<16x128xf32>
    %c0_4 = arith.constant 0 : index
    %c0_5 = arith.constant 0 : index
    %4 = vector.load %arg4[%c0_4, %c0_5] : memref<1x128xf32, #tpu.memory_space<vmem>>, vector<1x128xf32>
    %5 = vector.broadcast %4 : vector<1x128xf32> to vector<16x128xf32>
    %6 = arith.addf %3, %5 : vector<16x128xf32>
    %cst_6 = arith.constant 0.000000e+00 : f32
    %7 = vector.broadcast %cst_6 : f32 to vector<16x128xf32>
    %8 = arith.maximumf %6, %7 : vector<16x128xf32>
    %9 = arith.truncf %8 : vector<16x128xf32> to vector<16x128xbf16>
    %c0_7 = arith.constant 0 : index
    %c0_8 = arith.constant 0 : index
    %10 = vector.load %arg5[%c0_7, %c0_8] : memref<128x128xbf16, #tpu.memory_space<vmem>>, vector<128x128xbf16>
    %cst_9 = arith.constant dense<0.000000e+00> : vector<16x128xf32>
    %11 = tpu.matmul %9, %10, %cst_9 {dimension_numbers = #tpu.dot_dimension_numbers<[1], [0], [0], [1], [0, 0, 1, 1], [], []>} : vector<16x128xbf16>, vector<128x128xbf16>, vector<16x128xf32> -> vector<16x128xf32>
    %c0_10 = arith.constant 0 : index
    %c0_11 = arith.constant 0 : index
    %12 = vector.load %arg6[%c0_10, %c0_11] : memref<1x128xf32, #tpu.memory_space<vmem>>, vector<1x128xf32>
    %13 = vector.broadcast %12 : vector<1x128xf32> to vector<16x128xf32>
    %14 = arith.addf %11, %13 : vector<16x128xf32>
    %c0_12 = arith.constant 0 : index
    %c0_13 = arith.constant 0 : index
    %15 = vector.load %arg7[%c0_12, %c0_13] : memref<16x128xf32, #tpu.memory_space<vmem>>, vector<16x128xf32>
    tpu.vector_store %arg7[%c0_12, %c0_13], %14 {strides = array<i32>} : memref<16x128xf32, #tpu.memory_space<vmem>>, vector<16x128xf32>,
    return
  }
  func.func @transform_0(%arg0: i32, %arg1: i32) -> (i32, i32) {
    %c0_i32 = arith.constant 0 : i32
    %c0_i32_0 = arith.constant 0 : i32
    return %arg0, %c0_i32 : i32, i32
  }
  func.func @transform_1(%arg0: i32, %arg1: i32) -> (i32, i32, i32) {
    %c0_i32 = arith.constant 0 : i32
    %c0_i32_0 = arith.constant 0 : i32
    %c0_i32_1 = arith.constant 0 : i32
    return %arg1, %c0_i32, %c0_i32_0 : i32, i32, i32
  }
  func.func @transform_2(%arg0: i32, %arg1: i32) -> (i32, i32) {
    %c0_i32 = arith.constant 0 : i32
    %c0_i32_0 = arith.constant 0 : i32
    return %c0_i32, %arg1 : i32, i32
  }
  func.func @transform_3(%arg0: i32, %arg1: i32) -> (i32, i32) {
    %c0_i32 = arith.constant 0 : i32
    %c0_i32_0 = arith.constant 0 : i32
    return %arg1, %c0_i32 : i32, i32
  }
  func.func @transform_4(%arg0: i32, %arg1: i32) -> (i32, i32) {
    %c0_i32 = arith.constant 0 : i32
    %c0_i32_0 = arith.constant 0 : i32
    %c0_i32_1 = arith.constant 0 : i32
    return %c0_i32, %c0_i32_0 : i32, i32
  }
  func.func @transform_5(%arg0: i32, %arg1: i32) -> (i32, i32) {
    %c0_i32 = arith.constant 0 : i32
    %c0_i32_0 = arith.constant 0 : i32
    return %arg0, %c0_i32 : i32, i32
  }
}

</mosaic_0001>

<bundles_post_ra>
// kernel: tpu_custom_call.1
= control target key start
LH: loop header
LB: loop body
LE: loop exit
PB: predicated region body
PF: predicated region fallthrough
CT: control target
= control target key end

     0   :  { %10 = vsyncpa [#allocation4], 0  ;;  %s626_s0 = inlined_call_operand.hbm [shape: bf16[16,128], index: 0, kind: input, shape index: {}]   ;;  %s627_s1 = inlined_call_operand.hbm [shape: bf16[1,128,128], index: 1, kind: input, shape index: {}]   ;;  %s628_s2 = inlined_call_operand.vmem [shape: f32[1,128], index: 2, kind: input, shape index: {}]   ;;  %s629_s3 = inlined_call_operand.hbm [shape: bf16[128,128], index: 3, kind: input, shape index: {}]   ;;  %s630_s4 = inlined_call_operand.vmem [shape: f32[1,128], index: 4, kind: input, shape index: {}]   ;;  %s631_s5 = inlined_call_operand.hbm [shape: f32[16,128], index: 5, kind: output, shape index: {}]  }
   0x1   :  { %11 = vsyncpa [#allocation7], 0 }
   0x2   :  { %12 = vsyncpa [#allocation5], 0  ;;  %s516_s18 = smov [#allocation6]   ;;  %s517_s20 = smov [#allocation3]  }
   0x3   :  { %s30_s19 = sshll.u32 %s516_s18, 4  ;;  %s18_s21 = sshll.u32 %s517_s20, 4  ;;  %s31_s19 = int_to_ptr.vmem [resolvable:$true] %s30_s19  ;;  %s556_s21 = int_to_ptr.vmem [resolvable:$true] %s18_s21 }
   0x4   :  { %s422_s24 = scalar_lea.hbm %s627_s1, 1024 }
   0x5   :  { %p423_p0 = scmp.ne.s32.totalorder %s627_s1, %s422_s24  ;;  %p426_p1 = scmp.lt.u32.totalorder %s422_s24, %s627_s1 }
   0x7   :  { %p428_p2 = pnand %p426_p1, %p423_p0 }
   0x9   :  { %431 = shalt.err (!%p428_p2)
}
   0xa   :  { %s432_s29 = scalar_lea.vmem %s31_s19, 1024  ;;  %p437_p4 = scmp.lt.s32.totalorder %s31_s19, %s31_s19 }
   0xb   :  { %p433_p3 = scmp.ne.s32.totalorder %s31_s19, %s432_s29  ;;  %p438_p5 = scmp.lt.s32.totalorder %s432_s29, %s432_s29 }
   0xd   :  { %p439_p6 = por %p438_p5, %p437_p4 }
   0xf   :  { %p440_p7 = pnand %p439_p6, %p433_p3 }
  0x11   :  { %443 = shalt.err (!%p440_p7)
}
  0x12   :  { %s518_s30 = smov 64   ;;  %s519_s6 = smov 4  }
  0x13   :  { %36 = dma.hbm_to_vmem [thread:$0]  %s627_s1, 1024, %s31_s19, [#allocation7], %s518_s30, %s518_s30, %s519_s6  }
  0x14   :  { %s444_s11 = scalar_lea.hbm %s626_s0, 128 }
  0x15   :  { %p445_p8 = scmp.ne.s32.totalorder %s626_s0, %s444_s11  ;;  %p448_p9 = scmp.lt.u32.totalorder %s444_s11, %s626_s0 }
  0x17   :  { %p450_p10 = pnand %p448_p9, %p445_p8 }
  0x19   :  { %453 = shalt.err (!%p450_p10)
}
  0x1a   :  { %s454_s16 = scalar_lea.vmem %s556_s21, 128  ;;  %p459_p12 = scmp.lt.s32.totalorder %s556_s21, %s556_s21 }
  0x1b   :  { %p455_p11 = scmp.ne.s32.totalorder %s556_s21, %s454_s16  ;;  %p460_p13 = scmp.lt.s32.totalorder %s454_s16, %s454_s16 }
  0x1d   :  { %p461_p0 = por %p460_p13, %p459_p12 }
  0x1f   :  { %p462_p1 = pnand %p461_p0, %p455_p11 }
  0x21   :  { %465 = shalt.err (!%p462_p1)
}
  0x22   :  { %24 = dma.hbm_to_vmem [thread:$0]  %s626_s0, 128, %s556_s21, [#allocation4], %s518_s30, %s518_s30, %s519_s6  }
  0x23   :  { %s520_s18 = smov [#allocation8]   ;;  %s466_s23 = scalar_lea.hbm %s629_s3, 1024 }
  0x24   :  { %s44_s19 = sshll.u32 %s520_s18, 4  ;;  %p467_p2 = scmp.ne.s32.totalorder %s629_s3, %s466_s23  ;;  %s45_s19 = int_to_ptr.vmem [resolvable:$true] %s44_s19 }
  0x25   :  { %p470_p3 = scmp.lt.u32.totalorder %s466_s23, %s629_s3 }
  0x27   :  { %p472_p4 = pnand %p470_p3, %p467_p2 }
  0x29   :  { %475 = shalt.err (!%p472_p4)
}
  0x2a   :  { %s476_s28 = scalar_lea.vmem %s45_s19, 1024  ;;  %p481_p6 = scmp.lt.s32.totalorder %s45_s19, %s45_s19 }
  0x2b   :  { %p477_p5 = scmp.ne.s32.totalorder %s45_s19, %s476_s28  ;;  %p482_p7 = scmp.lt.s32.totalorder %s476_s28, %s476_s28 }
  0x2d   :  { %p483_p8 = por %p482_p7, %p481_p6 }
  0x2f   :  { %p484_p9 = pnand %p483_p8, %p477_p5 }
  0x31   :  { %487 = shalt.err (!%p484_p9)
}
  0x32   :  { %50 = dma.hbm_to_vmem [thread:$0]  %s629_s3, 1024, %s45_s19, [#allocation7], %s518_s30, %s518_s30, %s519_s6  }
  0x33   :  { %510 = dma.done.wait [#allocation4], 128  }
  0x34   :  { %511 = vsyncadd [#allocation4], 4294967168 }
  0x35   :  { %512 = dma.done.wait [#allocation7], 2048  }
  0x36   :  { %513 = vsyncadd [#allocation7], 4294965248  ;;  %v521_v0 = vmov 0.0   ;;  %vm522_vm0 = vmmov 0   ;;  %v405_v1 = vld [vmem:[#allocation6] sm:$0xff]   ;;  %v406_v2 = vld [vmem:[#allocation6 + $0x8] sm:$0xff]  }
  0x37   :  { %355 = vmatprep.subr.bf16.mxu0 %v521_v0  ;;  %371 = vmatprep.mubr.msk.bf16.mxu0 %vm522_vm0, %v521_v0  ;;  %v407_v3 = vld [vmem:[#allocation6 + $0x10] sm:$0xff]   ;;  %v414_v4 = vld [vmem:[#allocation8] sm:$0xff]   ;;  %v408_v5 = vld [vmem:[#allocation6 + $0x18] sm:$0xff]   ;;  %s523_s7 = smov [#allocation9]  }
  0x38   :  { %375 = vmatprep.subr.bf16.mxu1 %v521_v0  ;;  %391 = vmatprep.mubr.msk.bf16.mxu1 %vm522_vm0, %v521_v0  ;;  %v415_v6 = vld [vmem:[#allocation8 + $0x8] sm:$0xff]   ;;  %v409_v7 = vld [vmem:[#allocation6 + $0x20] sm:$0xff]   ;;  %v416_v8 = vld [vmem:[#allocation8 + $0x10] sm:$0xff]   ;;  %s305_s8 = sshll.u32 %s523_s7, 4  ;;  %s306_s8 = int_to_ptr.vmem [resolvable:$true] %s305_s8 }
  0x39   :  { %356 = vmatpush3.bf16.msra.mxu0 %v405_v1  ;;  %376 = vmatpush3.bf16.msra.mxu1 %v414_v4  ;;  %v410_v9 = vld [vmem:[#allocation6 + $0x28] sm:$0xff]   ;;  %v417_v10 = vld [vmem:[#allocation8 + $0x18] sm:$0xff]   ;;  %v411_v11 = vld [vmem:[#allocation6 + $0x30] sm:$0xff]   ;;  %p493_p11 = scmp.lt.s32.totalorder %s306_s8, %s306_s8 }
  0x3a   :  { %357 = vmatprep.subr.bf16.mxu0 %v521_v0  ;;  %377 = vmatprep.subr.bf16.mxu1 %v521_v0  ;;  %v418_v12 = vld [vmem:[#allocation8 + $0x20] sm:$0xff]   ;;  %v412_v13 = vld [vmem:[#allocation6 + $0x38] sm:$0xff]   ;;  %v419_v14 = vld [vmem:[#allocation8 + $0x28] sm:$0xff]  }
  0x3b   :  { %v413_v15 = vld [vmem:[#allocation3] sm:$0xff]   ;;  %v420_v16 = vld [vmem:[#allocation8 + $0x30] sm:$0xff]  }
  0x3c   :  { %v421_v17 = vld [vmem:[#allocation8 + $0x38] sm:$0xff]  }
  0x3d   :  { %358 = vmatpush3.bf16.msra.mxu0 %v406_v2  ;;  %378 = vmatpush3.bf16.msra.mxu1 %v415_v6  ;;  %v318_v18 = vld [vmem:[%s628_s2] ss:$0 sm:$0xff]  ;;  %s488_s2 = scalar_lea.vmem %s306_s8, 256 }
  0x3e   :  { %359 = vmatprep.subr.bf16.mxu0 %v521_v0  ;;  %379 = vmatprep.subr.bf16.mxu1 %v521_v0  ;;  %v328_v28 = vld [vmem:[%s630_s4] ss:$0 sm:$0xff]  ;;  %p489_p10 = scmp.ne.s32.totalorder %s306_s8, %s488_s2  ;;  %p494_p12 = scmp.lt.s32.totalorder %s488_s2, %s488_s2 }
  0x40   :  { %p495_p13 = por %p494_p12, %p493_p11 }
  0x41   :  { %360 = vmatpush3.bf16.msra.mxu0 %v407_v3  ;;  %380 = vmatpush3.bf16.msra.mxu1 %v416_v8 }
  0x42   :  { %361 = vmatprep.subr.bf16.mxu0 %v521_v0  ;;  %381 = vmatprep.subr.bf16.mxu1 %v521_v0  ;;  %p496_p0 = pnand %p495_p13, %p489_p10 }
  0x45   :  { %362 = vmatpush3.bf16.msra.mxu0 %v408_v5  ;;  %382 = vmatpush3.bf16.msra.mxu1 %v417_v10 }
  0x46   :  { %363 = vmatprep.subr.bf16.mxu0 %v521_v0  ;;  %383 = vmatprep.subr.bf16.mxu1 %v521_v0 }
  0x49   :  { %364 = vmatpush3.bf16.msra.mxu0 %v409_v7  ;;  %384 = vmatpush3.bf16.msra.mxu1 %v418_v12 }
  0x4a   :  { %365 = vmatprep.subr.bf16.mxu0 %v521_v0  ;;  %385 = vmatprep.subr.bf16.mxu1 %v521_v0 }
  0x4d   :  { %366 = vmatpush3.bf16.msra.mxu0 %v410_v9  ;;  %386 = vmatpush3.bf16.msra.mxu1 %v419_v14 }
  0x4e   :  { %367 = vmatprep.subr.bf16.mxu0 %v521_v0  ;;  %387 = vmatprep.subr.bf16.mxu1 %v521_v0 }
  0x51   :  { %368 = vmatpush3.bf16.msra.mxu0 %v411_v11  ;;  %388 = vmatpush3.bf16.msra.mxu1 %v420_v16 }
  0x52   :  { %369 = vmatprep.subr.bf16.mxu0 %v521_v0  ;;  %389 = vmatprep.subr.bf16.mxu1 %v521_v0 }
  0x55   :  { %370 = vmatpush3.bf16.msra.mxu0 %v412_v13  ;;  %390 = vmatpush3.bf16.msra.mxu1 %v421_v17 }
  0x58   :  { %372 = vmatmul.mubr.bf16.vlgmr.msra.gmra.mrb[0].mxu0 %v413_v15 }
 0x12b   :  { %v176_v19 = vpop.f32.mrb[0].mxu0 }
 0x12c   :  { %v177_v20 = vadd.f32 %v318_v18, %v176_v19  ;;  %v373_v21 = vpop.f32.mrb[1].mxu0 }
 0x12d   :  { %v179_v22 = vpop.f32.mrb[2].mxu0 }
 0x12e   :  { %v180_v23 = vadd.f32 %v318_v18, %v179_v22  ;;  %v374_v24 = vpop.f32.mrb[3].mxu0  ;;  %v183_v25 = vmax.f32 %v177_v20, 0.0 }
 0x130   :  { %v184_v26 = vmax.f32 %v180_v23, 0.0 }
 0x132   :  { %v185_v27 = vpack.c.bf16 %v184_v26, %v183_v25 }
 0x134   :  { %392 = vmatmul.mubr.bf16.vlgmr.msra.gmra.mrb[0].mxu1 %v185_v27 }
 0x207   :  { %v291_v29 = vpop.f32.mrb[0].mxu1 }
 0x208   :  { %v292_v30 = vadd.f32 %v328_v28, %v291_v29  ;;  %v393_v31 = vpop.f32.mrb[1].mxu1 }
 0x209   :  { %v294_v32 = vpop.f32.mrb[2].mxu1 }
 0x20a   :  { %298 = vst [vmem:[#allocation9] sm:$0xff] %v292_v30  ;;  %v295_v33 = vadd.f32 %v328_v28, %v294_v32  ;;  %v394_v34 = vpop.f32.mrb[3].mxu1 }
 0x20c   :  { %299 = vst [vmem:[#allocation9 + $0x8] sm:$0xff] %v295_v33 }
 0x20d   :  { %499 = shalt.err (!%p496_p0)
}
 0x20e   :  { %s500_s10 = scalar_lea.hbm %s631_s5, 256 }
 0x20f   :  { %p501_p1 = scmp.ne.s32.totalorder %s631_s5, %s500_s10  ;;  %p504_p2 = scmp.lt.u32.totalorder %s500_s10, %s631_s5 }
 0x211   :  { %p506_p3 = pnand %p504_p2, %p501_p1 }
 0x213   :  { %509 = shalt.err (!%p506_p3)
}
 0x214   :  { %s524_s15 = smov 128   ;;  %s525_s16 = smov 8  }
 0x215   :  { %311 = dma.vmem_to_hbm [thread:$0]  %s306_s8, 256, %s631_s5, [#allocation5], %s524_s15, %s524_s15, %s525_s16  }
 0x216   :  { %514 = dma.done.wait [#allocation5], 256  }
 0x217   :  { %515 = vsyncadd [#allocation5], 4294967040 }
 0x218   :  { %315 = vsyncpa [#allocation4], 1 }
 0x219   :  { %316 = vsyncpa [#allocation7], 1 }
 0x21a   :  { %317 = vsyncpa [#allocation5], 1 }

</bundles_post_ra>
